<compile_context>
chip_gen: v7x
topology: tpu7x:2x2x1
jax: 0.10.0
libtpu: 0.0.40
codegen_flags: <defaults>
</compile_context>

<pallas_src>
import numpy as np
import jax
import jax.numpy as jnp
from jax.experimental import pallas as pl
from jax.experimental.pallas import tpu as pltpu

_LANE = 128
_DEF_TILE = 512  # review: 512 tiles reach ~85% of HBM roofline vs ~63% at 256


# ----------------------------- helpers ---------------------------------------

def _round_up(x, m):
    return (x + m - 1) // m * m


def _vmem_limit_bytes():
    """Generation-aware VMEM scratch limit: ~75% of physical, never below the
    48 MiB v7x-safe baseline (v5e/v6e have 128 MiB physical -> ~96 MiB)."""
    cap = 64 * 1024 * 1024
    try:
        info = pltpu.get_tpu_info()
        cap = int(getattr(info, "vmem_capacity_bytes", cap))
    except Exception:
        pass
    return max(48 * 1024 * 1024, (cap * 3) // 4)


def _largest_tile(n_pad, limit):
    """Largest multiple of 128 that divides n_pad and is <= max(limit, 128)."""
    t = min(max(limit, _LANE), n_pad)
    t -= t % _LANE
    while t > _LANE and n_pad % t != 0:
        t -= _LANE
    return t


def _choose_tiles(n_pad, preferred=_DEF_TILE):
    """(row_tile, k_tile) for the tiled path.  Row tile is capped so the
    'parallel' row axis has >= 2 blocks (v7x has 2 TensorCores)."""
    tk = _largest_tile(n_pad, preferred)
    if n_pad >= 2 * _LANE:
        tn = _largest_tile(n_pad, min(preferred, n_pad // 2))
    else:
        tn = n_pad
    return tn, tk


# ----------------------------- kernels ---------------------------------------

def _agg_relu_kernel(a_ref, z_ref, b_ref, out_ref, acc_ref):
    """One row-tile of relu(A @ Z + b); grid dim 1 is the neighbor/contraction
    axis, accumulated in an f32 VMEM scratch.  Output is lane-dense (128)."""
    k = pl.program_id(1)

    @pl.when(k == 0)
    def _():
        acc_ref[...] = jnp.zeros_like(acc_ref)

    acc_ref[...] += jnp.dot(a_ref[...], z_ref[...],
                            preferred_element_type=jnp.float32)

    @pl.when(k == pl.num_programs(1) - 1)
    def _():
        # F.dropout(p=0.25, training=False) is the identity at inference time.
        # TODO(synk): training-mode dropout would use pltpu.prng_seed /
        # pltpu.prng_random_bits here.
        out_ref[...] = jnp.maximum(acc_ref[...] + b_ref[...], 0.0
                                   ).astype(out_ref.dtype)


def _pool_fc_kernel(p_ref, h_ref, wfc_ref, bfc_ref, out_ref, acc_ref):
    """global_mean_pool (P @ H, accumulated over node tiles) followed by fc."""
    k = pl.program_id(0)

    @pl.when(k == 0)
    def _():
        acc_ref[...] = jnp.zeros_like(acc_ref)

    acc_ref[...] += jnp.dot(p_ref[...], h_ref[...],
                            preferred_element_type=jnp.float32)

    @pl.when(k == pl.num_programs(0) - 1)
    def _():
        out_ref[...] = (jnp.dot(acc_ref[...].astype(jnp.bfloat16), wfc_ref[...],
                                preferred_element_type=jnp.float32)
                        + bfc_ref[...])


def _fused_kernel(a_ref, z1_ref, w2_ref, b1_ref, b2_ref, p_ref,
                  wfc_ref, bfc_ref, out_ref):
    """Resident-A fusion: A is DMA'd into VMEM once and used for both
    aggregations; conv1 -> conv2 -> mean-pool -> fc all on-chip."""
    f32, bf = jnp.float32, jnp.bfloat16
    a = a_ref[...]
    h1 = jnp.maximum(
        jnp.dot(a, z1_ref[...], preferred_element_type=f32) + b1_ref[...],
        0.0).astype(bf)
    # TODO(synk): training-mode dropout (p=0.25) would go here.
    z2 = jnp.dot(h1, w2_ref[...], preferred_element_type=f32).astype(bf)
    h2 = jnp.maximum(
        jnp.dot(a, z2, preferred_element_type=f32) + b2_ref[...],
        0.0).astype(bf)
    pooled = jnp.dot(p_ref[...], h2, preferred_element_type=f32).astype(bf)
    out_ref[...] = (jnp.dot(pooled, wfc_ref[...], preferred_element_type=f32)
                    + bfc_ref[...])


# ----------------------------- wrappers ---------------------------------------

def agg_relu(a_pad, z_pad, b_pad, *, row_block=None, k_block=None,
             vmem_limit=None):
    """relu(A @ Z + b) tiled over (rows of A, neighbor/k axis)."""
    n_pad = a_pad.shape[0]
    hp = z_pad.shape[1]
    tn_def, tk_def = _choose_tiles(n_pad)
    tn = row_block if row_block is not None else tn_def
    tk = k_block if k_block is not None else tk_def
    assert n_pad % tn == 0 and n_pad % tk == 0, (n_pad, tn, tk)
    vmem_limit = vmem_limit if vmem_limit is not None else _vmem_limit_bytes()

    cost = pl.CostEstimate(
        flops=int(2 * n_pad * n_pad * hp),
        transcendentals=0,
        bytes_accessed=int(a_pad.size * 2 + z_pad.size * 2 + b_pad.size * 4
                           + n_pad * hp * 2),
    )

    return pl.pallas_call(
        _agg_relu_kernel,
        out_shape=jax.ShapeDtypeStruct((n_pad, hp), jnp.bfloat16),
        grid_spec=pltpu.PrefetchScalarGridSpec(
            num_scalar_prefetch=0,
            grid=(n_pad // tn, n_pad // tk),
            in_specs=[
                pl.BlockSpec((tn, tk), lambda i, k: (i, k)),   # A row/col tile
                pl.BlockSpec((tk, hp), lambda i, k: (k, 0)),   # Z node tile
                pl.BlockSpec((1, hp), lambda i, k: (0, 0)),    # bias (resident)
            ],
            out_specs=pl.BlockSpec((tn, hp), lambda i, k: (i, 0)),
            scratch_shapes=[pltpu.VMEM((tn, hp), jnp.float32)],
        ),
        compiler_params=pltpu.CompilerParams(
            dimension_semantics=("parallel", "arbitrary"),
            vmem_limit_bytes=vmem_limit,
        ),
        cost_estimate=cost,
    )(a_pad, z_pad, b_pad)


def pool_fc(p_pad, h_pad, wfc_pad, bfc_pad, *, k_block=None, vmem_limit=None):
    """(P @ H) @ Wfc + bfc; all lane dims already padded to 128."""
    b_graphs, n_pad = p_pad.shape
    hp = h_pad.shape[1]
    cp = wfc_pad.shape[1]
    _, tk_def = _choose_tiles(n_pad)
    tk = k_block if k_block is not None else tk_def
    assert n_pad % tk == 0, (n_pad, tk)
    vmem_limit = vmem_limit if vmem_limit is not None else _vmem_limit_bytes()

    cost = pl.CostEstimate(
        flops=int(2 * b_graphs * n_pad * hp + 2 * b_graphs * hp * cp),
        transcendentals=0,
        bytes_accessed=int(p_pad.size * 2 + h_pad.size * 2 + wfc_pad.size * 2
                           + bfc_pad.size * 4 + b_graphs * cp * 4),
    )

    return pl.pallas_call(
        _pool_fc_kernel,
        out_shape=jax.ShapeDtypeStruct((b_graphs, cp), jnp.float32),
        grid_spec=pltpu.PrefetchScalarGridSpec(
            num_scalar_prefetch=0,
            grid=(n_pad // tk,),
            in_specs=[
                pl.BlockSpec((b_graphs, tk), lambda k: (0, k)),  # P node tile
                pl.BlockSpec((tk, hp), lambda k: (k, 0)),        # H node tile
                pl.BlockSpec((hp, cp), lambda k: (0, 0)),        # Wfc (resident)
                pl.BlockSpec((1, cp), lambda k: (0, 0)),         # bfc (resident)
            ],
            out_specs=pl.BlockSpec((b_graphs, cp), lambda k: (0, 0)),
            scratch_shapes=[pltpu.VMEM((b_graphs, hp), jnp.float32)],
        ),
        compiler_params=pltpu.CompilerParams(
            dimension_semantics=("arbitrary",),
            vmem_limit_bytes=vmem_limit,
        ),
        cost_estimate=cost,
    )(p_pad, h_pad, wfc_pad, bfc_pad)


def _fused_forward(a_pad, z1_pad, w2_pad, b1_pad, b2_pad, p_pad, wfc_pad,
                   bfc_pad, vmem_limit):
    n_pad = a_pad.shape[0]
    hp = z1_pad.shape[1]
    cp = wfc_pad.shape[1]
    b_graphs = p_pad.shape[0]

    cost = pl.CostEstimate(
        flops=int(4 * n_pad * n_pad * hp + 2 * n_pad * hp * hp
                  + 2 * b_graphs * n_pad * hp + 2 * b_graphs * hp * cp),
        transcendentals=0,
        bytes_accessed=int(a_pad.size * 2 + z1_pad.size * 2 + w2_pad.size * 2
                           + p_pad.size * 2 + wfc_pad.size * 2
                           + (b1_pad.size + b2_pad.size + bfc_pad.size) * 4
                           + b_graphs * cp * 4),
    )

    # Gridless call: every operand lives fully in VMEM, so A is read from HBM
    # exactly once for both conv layers.
    return pl.pallas_call(
        _fused_kernel,
        out_shape=jax.ShapeDtypeStruct((b_graphs, cp), jnp.float32),
        compiler_params=pltpu.CompilerParams(vmem_limit_bytes=vmem_limit),
        cost_estimate=cost,
    )(a_pad, z1_pad, w2_pad, b1_pad, b2_pad, p_pad, wfc_pad, bfc_pad)


def pdnnet_forward(x, a_norm, pool, params, *, use_fused=None,
                   row_block=None, k_block=None):
    n = x.shape[0]
    hidden = params["w1"].shape[1]
    num_classes = params["wfc"].shape[1]
    b_graphs = pool.shape[0]

    hp = _round_up(hidden, _LANE)         # lane-dense hidden width (32 -> 128)
    cp = _round_up(num_classes, _LANE)    # lane-dense fc output (3 -> 128)
    n_pad = _round_up(n, _LANE)           # padded node count
    vmem_limit = _vmem_limit_bytes()
    bf = jnp.bfloat16

    # Zero-padded operands: padded A rows AND cols are zero and padded pool
    # columns are zero, so padded nodes never contribute to real outputs.
    a_pad = jnp.zeros((n_pad, n_pad), jnp.float32).at[:n, :n].set(a_norm).astype(bf)
    p_pad = jnp.zeros((b_graphs, n_pad), jnp.float32).at[:, :n].set(pool).astype(bf)

    w2_pad = jnp.zeros((hp, hp), jnp.float32
                       ).at[:hidden, :hidden].set(params["w2"]).astype(bf)
    wfc_pad = jnp.zeros((hp, cp), jnp.float32
                        ).at[:hidden, :num_classes].set(params["wfc"]).astype(bf)
    b1_pad = jnp.zeros((1, hp), jnp.float32).at[:, :hidden].set(params["b1"])
    b2_pad = jnp.zeros((1, hp), jnp.float32).at[:, :hidden].set(params["b2"])
    bfc_pad = jnp.zeros((1, cp), jnp.float32).at[:, :num_classes].set(params["bfc"])

    # Z1 = X @ W1 is a tiny (K = in_channels) matmul: do it in XLA so the Pallas
    # kernel is a clean relu(A @ Z + b) with full-width MXU feeds.
    z1 = jnp.dot(x.astype(bf), params["w1"].astype(bf),
                 preferred_element_type=jnp.float32)
    z1_pad = jnp.zeros((n_pad, hp), jnp.float32).at[:n, :hidden].set(z1).astype(bf)

    if use_fused is None:
        # Keep A (plus margin for intermediates) well inside the scratch limit.
        use_fused = (2 * n_pad * n_pad * 2) <= int(vmem_limit * 0.6)

    if use_fused:
        out = _fused_forward(a_pad, z1_pad, w2_pad, b1_pad, b2_pad, p_pad,
                             wfc_pad, bfc_pad, vmem_limit)
    else:
        h1 = agg_relu(a_pad, z1_pad, b1_pad, row_block=row_block,
                      k_block=k_block, vmem_limit=vmem_limit)
        z2 = jnp.dot(h1, w2_pad, preferred_element_type=jnp.float32).astype(bf)
        h2 = agg_relu(a_pad, z2, b2_pad, row_block=row_block,
                      k_block=k_block, vmem_limit=vmem_limit)
        out = pool_fc(p_pad, h2, wfc_pad, bfc_pad, k_block=k_block,
                      vmem_limit=vmem_limit)
    return out[:, :num_classes]


# ----------------------------- glue (plain JAX/numpy) --------------------------

def gcn_norm_dense(edge_index, num_nodes):
    """Dense equivalent of PyG gcn_norm (unit weights): scatter-add duplicate
    edges and only add *remaining* self loops (fill value 1)."""
    adj = np.zeros((num_nodes, num_nodes), dtype=np.float32)
    src, dst = edge_index
    np.add.at(adj, (dst, src), 1.0)          # message flows src -> dst (row = dst)
    diag = np.arange(num_nodes)
    missing = adj[diag, diag] == 0.0
    adj[diag[missing], diag[missing]] = 1.0  # add_remaining_self_loops semantics
    deg = adj.sum(axis=1)
    dinv = 1.0 / np.sqrt(np.maximum(deg, 1e-12))
    return (dinv[:, None] * adj * dinv[None, :]).astype(np.float32)


def mean_pool_matrix(batch, num_graphs):
    n = batch.shape[0]
    p = np.zeros((num_graphs, n), dtype=np.float32)
    for b in range(num_graphs):
        idx = np.where(batch == b)[0]
        p[b, idx] = 1.0 / max(len(idx), 1)
    return p


def init_params(key, in_channels, hidden, num_classes):
    k1, k2, k3, k4, k5, k6 = jax.random.split(key, 6)
    s = 0.1
    return {
        # linear weights stored pre-transposed: [in, out]
        "w1": s * jax.random.normal(k1, (in_channels, hidden), jnp.float32),
        "b1": s * jax.random.normal(k2, (1, hidden), jnp.float32),
        "w2": s * jax.random.normal(k3, (hidden, hidden), jnp.float32),
        "b2": s * jax.random.normal(k4, (1, hidden), jnp.float32),
        "wfc": s * jax.random.normal(k5, (hidden, num_classes), jnp.float32),
        "bfc": s * jax.random.normal(k6, (1, num_classes), jnp.float32),
    }


def reference_forward(x, a_norm, pool, params):
    """Pure-JAX reference mirroring the kernels' bf16-operand / f32-accumulate
    numerics exactly (same casts, same math)."""
    bf, f32 = jnp.bfloat16, jnp.float32
    a_b = a_norm.astype(bf)
    p_b = pool.astype(bf)
    z1 = jnp.dot(x.astype(bf), params["w1"].astype(bf),
                 preferred_element_type=f32).astype(bf)
    h1 = jnp.maximum(jnp.dot(a_b, z1, preferred_element_type=f32)
                     + params["b1"], 0.0).astype(bf)
    z2 = jnp.dot(h1, params["w2"].astype(bf), preferred_element_type=f32).astype(bf)
    h2 = jnp.maximum(jnp.dot(a_b, z2, preferred_element_type=f32)
                     + params["b2"], 0.0).astype(bf)
    pooled = jnp.dot(p_b, h2, preferred_element_type=f32).astype(bf)
    return (jnp.dot(pooled, params["wfc"].astype(bf), preferred_element_type=f32)
            + params["bfc"])


if __name__ == "__main__":
    key = jax.random.PRNGKey(0)
    kx, kp = jax.random.split(key)

    # Two graphs of 128 nodes each (undirected rings) -> N=256 so both the fused
    # resident-A path and the 128x128 row/k tiling actually get exercised.
    nodes_per_graph, num_graphs = 128, 2
    num_nodes = nodes_per_graph * num_graphs
    in_channels, hidden, num_classes = 4, 32, 3

    batch = np.repeat(np.arange(num_graphs, dtype=np.int32), nodes_per_graph)
    src, dst = [], []
    for g in range(num_graphs):
        base = nodes_per_graph * g
        for i in range(nodes_per_graph):
            u, v = base + i, base + (i + 1) % nodes_per_graph
            src += [u, v]
            dst += [v, u]
    edge_index = np.stack([np.array(src, np.int32), np.array(dst, np.int32)])

    x = jax.random.normal(kx, (num_nodes, in_channels), jnp.float32)
    a_norm = jnp.asarray(gcn_norm_dense(edge_index, num_nodes))
    pool = jnp.asarray(mean_pool_matrix(batch, num_graphs))
    params = init_params(kp, in_channels, hidden, num_classes)

    ref = reference_forward(x, a_norm, pool, params)

    # Path 1: fused resident-A kernel (A streamed from HBM once).
    out_fused = jax.block_until_ready(
        pdnnet_forward(x, a_norm, pool, params, use_fused=True))
    np.testing.assert_allclose(np.asarray(out_fused), np.asarray(ref),
                               atol=5e-3, rtol=5e-3)

    # Path 2: tiled/pipelined fallback (conv grid (2,2), pool grid (2,)).
    out_tiled = jax.block_until_ready(
        pdnnet_forward(x, a_norm, pool, params, use_fused=False,
                       row_block=128, k_block=128))
    np.testing.assert_allclose(np.asarray(out_tiled), np.asarray(ref),
                               atol=5e-3, rtol=5e-3)

    print("KERNEL_OK")
</pallas_src>

<mosaic_0001>
module attributes {stable_mosaic.version = 11 : i64} {
  func.func @_fused_kernel(%arg0: memref<256x256xbf16, #tpu.memory_space<vmem>>, %arg1: memref<256x128xbf16, #tpu.memory_space<vmem>>, %arg2: memref<128x128xbf16, #tpu.memory_space<vmem>>, %arg3: memref<1x128xf32, #tpu.memory_space<vmem>>, %arg4: memref<1x128xf32, #tpu.memory_space<vmem>>, %arg5: memref<2x256xbf16, #tpu.memory_space<vmem>>, %arg6: memref<128x128xbf16, #tpu.memory_space<vmem>>, %arg7: memref<1x128xf32, #tpu.memory_space<vmem>>, %arg8: memref<2x128xf32, #tpu.memory_space<vmem>>) attributes {dimension_semantics = [], scalar_prefetch = 0 : i64, scratch_operands = 0 : i64, tpu.core_type = #tpu.core_type<tc>} {
    %c0 = arith.constant 0 : index
    %c0_0 = arith.constant 0 : index
    %0 = vector.load %arg0[%c0, %c0_0] : memref<256x256xbf16, #tpu.memory_space<vmem>>, vector<256x256xbf16>
    %c0_1 = arith.constant 0 : index
    %c0_2 = arith.constant 0 : index
    %1 = vector.load %arg1[%c0_1, %c0_2] : memref<256x128xbf16, #tpu.memory_space<vmem>>, vector<256x128xbf16>
    %cst = arith.constant dense<0.000000e+00> : vector<256x128xf32>
    %2 = tpu.matmul %0, %1, %cst {dimension_numbers = #tpu.dot_dimension_numbers<[1], [0], [0], [1], [0, 0, 1, 1], [], []>} : vector<256x256xbf16>, vector<256x128xbf16>, vector<256x128xf32> -> vector<256x128xf32>
    %c0_3 = arith.constant 0 : index
    %c0_4 = arith.constant 0 : index
    %3 = vector.load %arg3[%c0_3, %c0_4] : memref<1x128xf32, #tpu.memory_space<vmem>>, vector<1x128xf32>
    %4 = vector.broadcast %3 : vector<1x128xf32> to vector<256x128xf32>
    %5 = arith.addf %2, %4 : vector<256x128xf32>
    %cst_5 = arith.constant 0.000000e+00 : f32
    %6 = vector.broadcast %cst_5 : f32 to vector<256x128xf32>
    %7 = arith.maximumf %5, %6 : vector<256x128xf32>
    %8 = arith.truncf %7 : vector<256x128xf32> to vector<256x128xbf16>
    %c0_6 = arith.constant 0 : index
    %c0_7 = arith.constant 0 : index
    %9 = vector.load %arg2[%c0_6, %c0_7] : memref<128x128xbf16, #tpu.memory_space<vmem>>, vector<128x128xbf16>
    %cst_8 = arith.constant dense<0.000000e+00> : vector<256x128xf32>
    %10 = tpu.matmul %8, %9, %cst_8 {dimension_numbers = #tpu.dot_dimension_numbers<[1], [0], [0], [1], [0, 0, 1, 1], [], []>} : vector<256x128xbf16>, vector<128x128xbf16>, vector<256x128xf32> -> vector<256x128xf32>
    %11 = arith.truncf %10 : vector<256x128xf32> to vector<256x128xbf16>
    %cst_9 = arith.constant dense<0.000000e+00> : vector<256x128xf32>
    %12 = tpu.matmul %0, %11, %cst_9 {dimension_numbers = #tpu.dot_dimension_numbers<[1], [0], [0], [1], [0, 0, 1, 1], [], []>} : vector<256x256xbf16>, vector<256x128xbf16>, vector<256x128xf32> -> vector<256x128xf32>
    %c0_10 = arith.constant 0 : index
    %c0_11 = arith.constant 0 : index
    %13 = vector.load %arg4[%c0_10, %c0_11] : memref<1x128xf32, #tpu.memory_space<vmem>>, vector<1x128xf32>
    %14 = vector.broadcast %13 : vector<1x128xf32> to vector<256x128xf32>
    %15 = arith.addf %12, %14 : vector<256x128xf32>
    %cst_12 = arith.constant 0.000000e+00 : f32
    %16 = vector.broadcast %cst_12 : f32 to vector<256x128xf32>
    %17 = arith.maximumf %15, %16 : vector<256x128xf32>
    %18 = arith.truncf %17 : vector<256x128xf32> to vector<256x128xbf16>
    %c0_13 = arith.constant 0 : index
    %c0_14 = arith.constant 0 : index
    %19 = vector.load %arg5[%c0_13, %c0_14] : memref<2x256xbf16, #tpu.memory_space<vmem>>, vector<2x256xbf16>
    %cst_15 = arith.constant dense<0.000000e+00> : vector<2x128xf32>
    %20 = tpu.matmul %19, %18, %cst_15 {dimension_numbers = #tpu.dot_dimension_numbers<[1], [0], [0], [1], [0, 0, 1, 1], [], []>} : vector<2x256xbf16>, vector<256x128xbf16>, vector<2x128xf32> -> vector<2x128xf32>
    %21 = arith.truncf %20 : vector<2x128xf32> to vector<2x128xbf16>
    %c0_16 = arith.constant 0 : index
    %c0_17 = arith.constant 0 : index
    %22 = vector.load %arg6[%c0_16, %c0_17] : memref<128x128xbf16, #tpu.memory_space<vmem>>, vector<128x128xbf16>
    %cst_18 = arith.constant dense<0.000000e+00> : vector<2x128xf32>
    %23 = tpu.matmul %21, %22, %cst_18 {dimension_numbers = #tpu.dot_dimension_numbers<[1], [0], [0], [1], [0, 0, 1, 1], [], []>} : vector<2x128xbf16>, vector<128x128xbf16>, vector<2x128xf32> -> vector<2x128xf32>
    %c0_19 = arith.constant 0 : index
    %c0_20 = arith.constant 0 : index
    %24 = vector.load %arg7[%c0_19, %c0_20] : memref<1x128xf32, #tpu.memory_space<vmem>>, vector<1x128xf32>
    %25 = vector.broadcast %24 : vector<1x128xf32> to vector<2x128xf32>
    %26 = arith.addf %23, %25 : vector<2x128xf32>
    %c0_21 = arith.constant 0 : index
    %c0_22 = arith.constant 0 : index
    %27 = vector.load %arg8[%c0_21, %c0_22] : memref<2x128xf32, #tpu.memory_space<vmem>>, vector<2x128xf32>
    tpu.vector_store %arg8[%c0_21, %c0_22], %26 {strides = array<i32>} : memref<2x128xf32, #tpu.memory_space<vmem>>, vector<2x128xf32>,
    return
  }
}

</mosaic_0001>

<bundles_post_ra>
// kernel: tpu_custom_call.1
= control target key start
LH: loop header
LB: loop body
LE: loop exit
PB: predicated region body
PF: predicated region fallthrough
CT: control target
= control target key end

     0   :  { %13 = vsyncpa [#allocation3], 0  ;;  %s2277_s0 = inlined_call_operand.hbm [shape: bf16[256,256], index: 0, kind: input, shape index: {}]   ;;  %s2278_s1 = inlined_call_operand.hbm [shape: bf16[256,128], index: 1, kind: input, shape index: {}]   ;;  %s2279_s2 = inlined_call_operand.hbm [shape: bf16[128,128], index: 2, kind: input, shape index: {}]   ;;  %s2280_s3 = inlined_call_operand.vmem [shape: f32[1,128], index: 3, kind: input, shape index: {}]   ;;  %s2281_s4 = inlined_call_operand.vmem [shape: f32[1,128], index: 4, kind: input, shape index: {}]   ;;  %s2282_s5 = inlined_call_operand.vmem [shape: bf16[2,256], index: 5, kind: input, shape index: {}]   ;;  %s2283_s6 = inlined_call_operand.hbm [shape: bf16[128,128], index: 6, kind: input, shape index: {}]   ;;  %s2284_s7 = inlined_call_operand.vmem [shape: f32[1,128], index: 7, kind: input, shape index: {}]   ;;  %s2285_s8 = inlined_call_operand.hbm [shape: f32[2,128], index: 8, kind: output, shape index: {}]  }
   0x1   :  { %14 = vsyncpa [#allocation6], 0 }
   0x2   :  { %15 = vsyncpa [#allocation9], 0 }
   0x3   :  { %16 = vsyncpa [#allocation4], 0  ;;  %s1900_s27 = smov [#allocation5]   ;;  %s1782_s9 = scalar_lea.hbm %s2278_s1, 2048 }
   0x4   :  { %s34_s28 = sshll.u32 %s1900_s27, 4  ;;  %p1783_p0 = scmp.ne.s32.totalorder %s2278_s1, %s1782_s9  ;;  %s35_s28 = int_to_ptr.vmem [resolvable:$true] %s34_s28 }
   0x5   :  { %p1786_p1 = scmp.lt.u32.totalorder %s1782_s9, %s2278_s1 }
   0x7   :  { %p1788_p2 = pnand %p1786_p1, %p1783_p0 }
   0x9   :  { %1791 = shalt.err (!%p1788_p2)
}
   0xa   :  { %s1792_s14 = scalar_lea.vmem %s35_s28, 2048  ;;  %p1797_p4 = scmp.lt.s32.totalorder %s35_s28, %s35_s28 }
   0xb   :  { %p1793_p3 = scmp.ne.s32.totalorder %s35_s28, %s1792_s14  ;;  %p1798_p5 = scmp.lt.s32.totalorder %s1792_s14, %s1792_s14 }
   0xd   :  { %p1799_p6 = por %p1798_p5, %p1797_p4 }
   0xf   :  { %p1800_p7 = pnand %p1799_p6, %p1793_p3 }
  0x11   :  { %1803 = shalt.err (!%p1800_p7)
}
  0x12   :  { %s1901_s15 = smov 64   ;;  %s1902_s16 = smov 4  }
  0x13   :  { %40 = dma.hbm_to_vmem [thread:$0]  %s2278_s1, 2048, %s35_s28, [#allocation6], %s1901_s15, %s1901_s15, %s1902_s16  }
  0x14   :  { %s1903_s19 = smov [#allocation2]   ;;  %s1804_s23 = scalar_lea.hbm %s2277_s0, 4096 }
  0x15   :  { %s22_s20 = sshll.u32 %s1903_s19, 4  ;;  %p1805_p8 = scmp.ne.s32.totalorder %s2277_s0, %s1804_s23  ;;  %s23_s20 = int_to_ptr.vmem [resolvable:$true] %s22_s20 }
  0x16   :  { %p1808_p9 = scmp.lt.u32.totalorder %s1804_s23, %s2277_s0 }
  0x18   :  { %p1810_p10 = pnand %p1808_p9, %p1805_p8 }
  0x1a   :  { %1813 = shalt.err (!%p1810_p10)
}
  0x1b   :  { %s1814_s29 = scalar_lea.vmem %s23_s20, 4096  ;;  %p1819_p12 = scmp.lt.s32.totalorder %s23_s20, %s23_s20 }
  0x1c   :  { %p1815_p11 = scmp.ne.s32.totalorder %s23_s20, %s1814_s29  ;;  %p1820_p13 = scmp.lt.s32.totalorder %s1814_s29, %s1814_s29 }
  0x1e   :  { %p1821_p0 = por %p1820_p13, %p1819_p12 }
  0x20   :  { %p1822_p1 = pnand %p1821_p0, %p1815_p11 }
  0x22   :  { %1825 = shalt.err (!%p1822_p1)
}
  0x23   :  { %s1904_s1 = smov 128   ;;  %s1905_s28 = smov 8  }
  0x24   :  { %28 = dma.hbm_to_vmem [thread:$0]  %s2277_s0, 4096, %s23_s20, [#allocation3], %s1904_s1, %s1904_s1, %s1905_s28  }
  0x25   :  { %s1906_s10 = smov [#allocation7]   ;;  %s1907_s12 = smov [#allocation8]  }
  0x26   :  { %s46_s11 = sshll.u32 %s1906_s10, 4  ;;  %s64_s13 = sshll.u32 %s1907_s12, 4  ;;  %s47_s11 = int_to_ptr.vmem [resolvable:$true] %s46_s11  ;;  %s1984_s13 = int_to_ptr.vmem [resolvable:$true] %s64_s13 }
  0x27   :  { %s1826_s18 = scalar_lea.hbm %s2279_s2, 1024 }
  0x28   :  { %p1827_p2 = scmp.ne.s32.totalorder %s2279_s2, %s1826_s18  ;;  %p1830_p3 = scmp.lt.u32.totalorder %s1826_s18, %s2279_s2 }
  0x2a   :  { %p1832_p4 = pnand %p1830_p3, %p1827_p2 }
  0x2c   :  { %1835 = shalt.err (!%p1832_p4)
}
  0x2d   :  { %s1836_s0 = scalar_lea.vmem %s47_s11, 1024  ;;  %p1841_p6 = scmp.lt.s32.totalorder %s47_s11, %s47_s11 }
  0x2e   :  { %p1837_p5 = scmp.ne.s32.totalorder %s47_s11, %s1836_s0  ;;  %p1842_p7 = scmp.lt.s32.totalorder %s1836_s0, %s1836_s0 }
  0x30   :  { %p1843_p8 = por %p1842_p7, %p1841_p6 }
  0x32   :  { %p1844_p9 = pnand %p1843_p8, %p1837_p5 }
  0x34   :  { %1847 = shalt.err (!%p1844_p9)
}
  0x35   :  { %52 = dma.hbm_to_vmem [thread:$0]  %s2279_s2, 1024, %s47_s11, [#allocation6], %s1901_s15, %s1901_s15, %s1902_s16  }
  0x36   :  { %s1848_s27 = scalar_lea.hbm %s2283_s6, 1024 }
  0x37   :  { %p1849_p10 = scmp.ne.s32.totalorder %s2283_s6, %s1848_s27  ;;  %p1852_p11 = scmp.lt.u32.totalorder %s1848_s27, %s2283_s6 }
  0x39   :  { %p1854_p12 = pnand %p1852_p11, %p1849_p10 }
  0x3b   :  { %1857 = shalt.err (!%p1854_p12)
}
  0x3c   :  { %s1858_s9 = scalar_lea.vmem %s1984_s13, 1024  ;;  %p1863_p0 = scmp.lt.s32.totalorder %s1984_s13, %s1984_s13 }
  0x3d   :  { %p1859_p13 = scmp.ne.s32.totalorder %s1984_s13, %s1858_s9  ;;  %p1864_p1 = scmp.lt.s32.totalorder %s1858_s9, %s1858_s9 }
  0x3f   :  { %p1865_p2 = por %p1864_p1, %p1863_p0 }
  0x41   :  { %p1866_p3 = pnand %p1865_p2, %p1859_p13 }
  0x43   :  { %1869 = shalt.err (!%p1866_p3)
}
  0x44   :  { %70 = dma.hbm_to_vmem [thread:$0]  %s2283_s6, 1024, %s1984_s13, [#allocation9], %s1901_s15, %s1901_s15, %s1902_s16  }
  0x45   :  { %1892 = dma.done.wait [#allocation3], 4096  }
  0x46   :  { %1893 = vsyncadd [#allocation3], 4294963200 }
  0x47   :  { %1894 = dma.done.wait [#allocation6], 3072  }
  0x48   :  { %1895 = vsyncadd [#allocation6], 4294964224 }
  0x49   :  { %1896 = dma.done.wait [#allocation9], 1024  }
  0x4a   :  { %1897 = vsyncadd [#allocation9], 4294966272  ;;  %v1702_v0 = vld [vmem:[#allocation5 + $0x40] sm:$0xff]   ;;  %v1704_v2 = vld [vmem:[#allocation5 + $0x48] sm:$0xff]   ;;  %vm1910_vm0 = vmmov 0   ;;  %s1911_s13 = smov [#allocation10]  }
  0x4b   :  { %v1703_v1 = vld [vmem:[#allocation5] sm:$0xff]   ;;  %1343 = vmatprep.subr.bf16.mxu0 %v1702_v0  ;;  %v1705_v3 = vld [vmem:[#allocation5 + $0x8] sm:$0xff]   ;;  %v1706_v4 = vld [vmem:[#allocation5 + $0x50] sm:$0xff]   ;;  %s1264_s14 = sshll.u32 %s1911_s13, 4  ;;  %s1265_s14 = int_to_ptr.vmem [resolvable:$true] %s1264_s14 }
  0x4c   :  { %1344 = vmatpush3.bf16.msra.mxu0 %v1703_v1  ;;  %v1707_v5 = vld [vmem:[#allocation5 + $0x10] sm:$0xff]   ;;  %v1708_v6 = vld [vmem:[#allocation5 + $0x58] sm:$0xff]   ;;  %v1710_v8 = vld [vmem:[#allocation5 + $0x60] sm:$0xff]   ;;  %s1870_s17 = scalar_lea.vmem %s1265_s14, 32  ;;  %p1875_p5 = scmp.lt.s32.totalorder %s1265_s14, %s1265_s14 }
  0x4d   :  { %1345 = vmatprep.subr.bf16.mxu0 %v1704_v2  ;;  %v1709_v7 = vld [vmem:[#allocation5 + $0x18] sm:$0xff]   ;;  %v1711_v9 = vld [vmem:[#allocation5 + $0x20] sm:$0xff]   ;;  %v1712_v10 = vld [vmem:[#allocation5 + $0x68] sm:$0xff]   ;;  %p1871_p4 = scmp.ne.s32.totalorder %s1265_s14, %s1870_s17  ;;  %p1876_p6 = scmp.lt.s32.totalorder %s1870_s17, %s1870_s17 }
  0x4e   :  { %v2021_v11 = vld [vmem:[#allocation2 + $0x4] ss:$8 sps:$4 sm:$0xff]   ;;  %v1714_v13 = vld [vmem:[#allocation5 + $0x70] sm:$0xff]   ;;  %v1716_v15 = vld [vmem:[#allocation5 + $0x78] sm:$0xff]  }
  0x4f   :  { %v1713_v12 = vld [vmem:[#allocation5 + $0x28] sm:$0xff]   ;;  %445 = vmatprep.mubr.bf16.mxu0 %v2021_v11  ;;  %v1715_v14 = vld [vmem:[#allocation5 + $0x30] sm:$0xff]   ;;  %v1717_v16 = vld [vmem:[#allocation5 + $0x38] sm:$0xff]   ;;  %p1877_p7 = por %p1876_p6, %p1875_p5 }
  0x50   :  { %1346 = vmatpush3.bf16.msra.mxu0 %v1705_v3  ;;  %v2024_v17 = vld [vmem:[#allocation2] ss:$8 sps:$4 sm:$0xff]   ;;  %v2026_v18 = vld [vmem:[#allocation2 + $0x14] ss:$8 sps:$4 sm:$0xff]   ;;  %v2030_v19 = vld [vmem:[#allocation2 + $0x10] ss:$8 sps:$4 sm:$0xff]  }
  0x51   :  { %1347 = vmatprep.subr.bf16.mxu0 %v1706_v4  ;;  %v2032_v20 = vld [vmem:[#allocation2 + $0x24] ss:$8 sps:$4 sm:$0xff]   ;;  %v1768_v23 = vld [vmem:[#allocation7 + $0x10] sm:$0xff]   ;;  %v2036_v24 = vld [vmem:[#allocation2 + $0x20] ss:$8 sps:$4 sm:$0xff]   ;;  %p1878_p8 = pnand %p1877_p7, %p1871_p4 }
  0x52   :  { %v1766_v21 = vld [vmem:[#allocation7] sm:$0xff]   ;;  %v1767_v22 = vld [vmem:[#allocation7 + $0x8] sm:$0xff]   ;;  %v2038_v25 = vld [vmem:[#allocation2 + $0x34] ss:$8 sps:$4 sm:$0xff]  }
  0x53   :  { %1622 = vmatprep.subr.bf16.mxu1 %v1766_v21  ;;  %v2042_v26 = vld [vmem:[#allocation2 + $0x30] ss:$8 sps:$4 sm:$0xff]   ;;  %v2044_v27 = vld [vmem:[#allocation2 + $0x44] ss:$8 sps:$4 sm:$0xff]   ;;  %v2048_v28 = vld [vmem:[#allocation2 + $0x40] ss:$8 sps:$4 sm:$0xff]  }
  0x54   :  { %1348 = vmatpush3.bf16.msra.mxu0 %v1707_v5  ;;  %1623 = vmatpush3.bf16.msra.mxu1 %v1766_v21  ;;  %v2050_v29 = vld [vmem:[#allocation2 + $0x54] ss:$8 sps:$4 sm:$0xff]   ;;  %v2054_v30 = vld [vmem:[#allocation2 + $0x50] ss:$8 sps:$4 sm:$0xff]   ;;  %v2056_v31 = vld [vmem:[#allocation2 + $0x64] ss:$8 sps:$4 sm:$0xff]  }
  0x55   :  { %1349 = vmatprep.subr.bf16.mxu0 %v1708_v6  ;;  %1624 = vmatprep.subr.bf16.mxu1 %v1767_v22  ;;  %v2060_v32 = vld [vmem:[#allocation2 + $0x60] ss:$8 sps:$4 sm:$0xff]   ;;  %v2062_v33 = vld [vmem:[#allocation2 + $0x74] ss:$8 sps:$4 sm:$0xff]   ;;  %v2066_v34 = vld [vmem:[#allocation2 + $0x70] ss:$8 sps:$4 sm:$0xff]  }
  0x56   :  { %v2068_v35 = vld [vmem:[#allocation2 + $0x84] ss:$8 sps:$4 sm:$0xff]   ;;  %v2072_v36 = vld [vmem:[#allocation2 + $0x80] ss:$8 sps:$4 sm:$0xff]   ;;  %v2074_v37 = vld [vmem:[#allocation2 + $0x94] ss:$8 sps:$4 sm:$0xff]  }
  0x57   :  { %v2078_v38 = vld [vmem:[#allocation2 + $0x90] ss:$8 sps:$4 sm:$0xff]   ;;  %v2080_v39 = vld [vmem:[#allocation2 + $0xa4] ss:$8 sps:$4 sm:$0xff]   ;;  %v2084_v40 = vld [vmem:[#allocation2 + $0xa0] ss:$8 sps:$4 sm:$0xff]  }
  0x58   :  { %1350 = vmatpush3.bf16.msra.mxu0 %v1709_v7  ;;  %1625 = vmatpush3.bf16.msra.mxu1 %v1767_v22  ;;  %v2086_v41 = vld [vmem:[#allocation2 + $0xb4] ss:$8 sps:$4 sm:$0xff]   ;;  %v2090_v43 = vld [vmem:[#allocation2 + $0xb0] ss:$8 sps:$4 sm:$0xff]   ;;  %v2092_v44 = vld [vmem:[#allocation2 + $0xc4] ss:$8 sps:$4 sm:$0xff]  }
  0x59   :  { %1351 = vmatprep.subr.bf16.mxu0 %v1710_v8  ;;  %1626 = vmatprep.subr.bf16.mxu1 %v1768_v23  ;;  %v1769_v42 = vld [vmem:[#allocation7 + $0x18] sm:$0xff]   ;;  %v1770_v45 = vld [vmem:[#allocation7 + $0x20] sm:$0xff]   ;;  %v1771_v46 = vld [vmem:[#allocation7 + $0x28] sm:$0xff]  }
  0x5a   :  { %v2096_v47 = vld [vmem:[#allocation2 + $0xc0] ss:$8 sps:$4 sm:$0xff]   ;;  %v2098_v48 = vld [vmem:[#allocation2 + $0xd4] ss:$8 sps:$4 sm:$0xff]   ;;  %v2102_v51 = vld [vmem:[#allocation2 + $0xd0] ss:$8 sps:$4 sm:$0xff]  }
  0x5b   :  { %v1772_v49 = vld [vmem:[#allocation7 + $0x30] sm:$0xff]   ;;  %v1773_v50 = vld [vmem:[#allocation7 + $0x38] sm:$0xff]   ;;  %v2104_v52 = vld [vmem:[#allocation2 + $0xe4] ss:$8 sps:$4 sm:$0xff]  }
  0x5c   :  { %1352 = vmatpush3.bf16.msra.mxu0 %v1711_v9  ;;  %1627 = vmatpush3.bf16.msra.mxu1 %v1768_v23  ;;  %v2108_v53 = vld [vmem:[#allocation2 + $0xe0] ss:$8 sps:$4 sm:$0xff]   ;;  %v2110_v54 = vld [vmem:[#allocation2 + $0xf4] ss:$8 sps:$4 sm:$0xff]   ;;  %v2114_v55 = vld [vmem:[#allocation2 + $0xf0] ss:$8 sps:$4 sm:$0xff]  }
  0x5d   :  { %1353 = vmatprep.subr.bf16.mxu0 %v1712_v10  ;;  %1628 = vmatprep.subr.bf16.mxu1 %v1769_v42  ;;  %v2120_v58 = vld [vmem:[%s2280_s3] ss:$0 sm:$0xff] }
  0x60   :  { %1354 = vmatpush3.bf16.msra.mxu0 %v1713_v12  ;;  %1629 = vmatpush3.bf16.msra.mxu1 %v1769_v42 }
  0x61   :  { %1355 = vmatprep.subr.bf16.mxu0 %v1714_v13  ;;  %1630 = vmatprep.subr.bf16.mxu1 %v1770_v45 }
  0x64   :  { %1356 = vmatpush3.bf16.msra.mxu0 %v1715_v14  ;;  %1631 = vmatpush3.bf16.msra.mxu1 %v1770_v45 }
  0x65   :  { %1357 = vmatprep.subr.bf16.mxu0 %v1716_v15  ;;  %1632 = vmatprep.subr.bf16.mxu1 %v1771_v46 }
  0x68   :  { %1358 = vmatpush3.bf16.msra.mxu0 %v1717_v16  ;;  %1633 = vmatpush3.bf16.msra.mxu1 %v1771_v46 }
  0x69   :  { %1634 = vmatprep.subr.bf16.mxu1 %v1772_v49 }
  0x6b   :  { %446 = vmatmul.mubr.bf16.vlgmr.msra.gmra.mrb[0].mxu0 %v2024_v17 }
  0x6c   :  { %453 = vmatprep.mubr.bf16.mxu0 %v2026_v18  ;;  %1635 = vmatpush3.bf16.msra.mxu1 %v1772_v49 }
  0x6d   :  { %1636 = vmatprep.subr.bf16.mxu1 %v1773_v50 }
  0x70   :  { %1637 = vmatpush3.bf16.msra.mxu1 %v1773_v50 }
  0x73   :  { %454 = vmatmul.mubr.bf16.gmra.mrb[4].mxu0 %v2030_v19 }
  0x74   :  { %461 = vmatprep.mubr.bf16.mxu0 %v2032_v20 }
  0x7b   :  { %462 = vmatmul.mubr.bf16.gmra.mrb[8].mxu0 %v2036_v24 }
  0x7c   :  { %469 = vmatprep.mubr.bf16.mxu0 %v2038_v25 }
  0x83   :  { %470 = vmatmul.mubr.bf16.gmra.mrb[12].mxu0 %v2042_v26 }
  0x84   :  { %477 = vmatprep.mubr.bf16.mxu0 %v2044_v27 }
  0x8b   :  { %478 = vmatmul.mubr.bf16.gmra.mrb[16].mxu0 %v2048_v28 }
  0x8c   :  { %485 = vmatprep.mubr.bf16.mxu0 %v2050_v29 }
  0x93   :  { %486 = vmatmul.mubr.bf16.gmra.mrb[20].mxu0 %v2054_v30 }
  0x94   :  { %493 = vmatprep.mubr.bf16.mxu0 %v2056_v31 }
  0x9b   :  { %494 = vmatmul.mubr.bf16.gmra.mrb[24].mxu0 %v2060_v32 }
  0x9c   :  { %501 = vmatprep.mubr.bf16.mxu0 %v2062_v33 }
  0xa3   :  { %502 = vmatmul.mubr.bf16.gmra.mrb[28].mxu0 %v2066_v34 }
  0xa4   :  { %509 = vmatprep.mubr.bf16.mxu0 %v2068_v35 }
  0xab   :  { %510 = vmatmul.mubr.bf16.gmra.mrb[32].mxu0 %v2072_v36 }
  0xac   :  { %517 = vmatprep.mubr.bf16.mxu0 %v2074_v37 }
  0xb3   :  { %518 = vmatmul.mubr.bf16.gmra.mrb[36].mxu0 %v2078_v38 }
  0xb4   :  { %525 = vmatprep.mubr.bf16.mxu0 %v2080_v39 }
  0xbb   :  { %526 = vmatmul.mubr.bf16.gmra.mrb[40].mxu0 %v2084_v40 }
  0xbc   :  { %533 = vmatprep.mubr.bf16.mxu0 %v2086_v41 }
  0xc3   :  { %534 = vmatmul.mubr.bf16.gmra.mrb[44].mxu0 %v2090_v43 }
  0xc4   :  { %541 = vmatprep.mubr.bf16.mxu0 %v2092_v44 }
  0xcb   :  { %542 = vmatmul.mubr.bf16.gmra.mrb[48].mxu0 %v2096_v47 }
  0xcc   :  { %549 = vmatprep.mubr.bf16.mxu0 %v2098_v48 }
  0xd3   :  { %550 = vmatmul.mubr.bf16.gmra.mrb[52].mxu0 %v2102_v51 }
  0xd4   :  { %557 = vmatprep.mubr.bf16.mxu0 %v2104_v52 }
  0xdb   :  { %558 = vmatmul.mubr.bf16.gmra.mrb[56].mxu0 %v2108_v53 }
  0xdc   :  { %565 = vmatprep.mubr.bf16.mxu0 %v2110_v54 }
  0xe3   :  { %566 = vmatmul.mubr.bf16.gmra.mrb[60].mxu0 %v2114_v55 }
 0x13e   :  { %v1359_v56 = vpop.f32.mrb[0].mxu0 }
 0x13f   :  { %v1360_v57 = vpop.f32.mrb[1].mxu0 }
 0x140   :  { %v1361_v59 = vadd.f32 %v1360_v57, %v1359_v56  ;;  %v1362_v60 = vpop.f32.mrb[2].mxu0 }
 0x141   :  { %v1363_v61 = vpop.f32.mrb[3].mxu0 }
 0x142   :  { %v1364_v62 = vadd.f32 %v1363_v61, %v1362_v60  ;;  %v448_v63 = vadd.f32 %v1361_v59, %v2120_v58 }
 0x144   :  { %v451_v0 = vadd.f32 %v1364_v62, %v2120_v58  ;;  %v574_v2 = vmax.f32 %v448_v63, 0.0 }
 0x146   :  { %v1365_v1 = vpop.f32.mrb[4].mxu0  ;;  %v575_v3 = vmax.f32 %v451_v0, 0.0 }
 0x147   :  { %v1366_v4 = vpop.f32.mrb[5].mxu0 }
 0x148   :  { %v1367_v5 = vadd.f32 %v1366_v4, %v1365_v1  ;;  %v1368_v6 = vpop.f32.mrb[6].mxu0  ;;  %v606_v7 = vpack.c.bf16 %v575_v3, %v574_v2 }
 0x149   :  { %v1369_v8 = vpop.f32.mrb[7].mxu0 }
 0x14a   :  { %v456_v9 = vadd.f32 %v1367_v5, %v2120_v58  ;;  %v1370_v10 = vadd.f32 %v1369_v8, %v1368_v6  ;;  %1638 = vmatprep.mubr.bf16.mxu1 %v606_v7 }
 0x14c   :  { %v459_v12 = vadd.f32 %v1370_v10, %v2120_v58  ;;  %v576_v13 = vmax.f32 %v456_v9, 0.0 }
 0x14e   :  { %v577_v14 = vmax.f32 %v459_v12, 0.0  ;;  %v1371_v15 = vpop.f32.mrb[8].mxu0 }
 0x14f   :  { %v1372_v16 = vpop.f32.mrb[9].mxu0 }
 0x150   :  { %v1373_v21 = vadd.f32 %v1372_v16, %v1371_v15  ;;  %v1374_v22 = vpop.f32.mrb[10].mxu0  ;;  %v607_v23 = vpack.c.bf16 %v577_v14, %v576_v13 }
 0x151   :  { %v1375_v42 = vpop.f32.mrb[11].mxu0 }
 0x152   :  { %v464_v45 = vadd.f32 %v1373_v21, %v2120_v58  ;;  %v1376_v46 = vadd.f32 %v1375_v42, %v1374_v22  ;;  %1639 = vmatmul.mubr.bf16.vlgmr.msra.gmra.mrb[0].mxu1 %v607_v23 }
 0x154   :  { %v467_v49 = vadd.f32 %v1376_v46, %v2120_v58  ;;  %v578_v50 = vmax.f32 %v464_v45, 0.0 }
 0x156   :  { %v579_v56 = vmax.f32 %v467_v49, 0.0  ;;  %v1377_v57 = vpop.f32.mrb[12].mxu0 }
 0x157   :  { %v1378_v59 = vpop.f32.mrb[13].mxu0 }
 0x158   :  { %v1379_v60 = vadd.f32 %v1378_v59, %v1377_v57  ;;  %v1380_v61 = vpop.f32.mrb[14].mxu0  ;;  %v608_v62 = vpack.c.bf16 %v579_v56, %v578_v50 }
 0x159   :  { %v1381_v63 = vpop.f32.mrb[15].mxu0 }
 0x15a   :  { %v472_v0 = vadd.f32 %v1379_v60, %v2120_v58  ;;  %v1382_v1 = vadd.f32 %v1381_v63, %v1380_v61  ;;  %1642 = vmatprep.mubr.bf16.mxu1 %v608_v62 }
 0x15c   :  { %v475_v2 = vadd.f32 %v1382_v1, %v2120_v58  ;;  %v580_v3 = vmax.f32 %v472_v0, 0.0 }
 0x15e   :  { %v581_v4 = vmax.f32 %v475_v2, 0.0  ;;  %v1383_v5 = vpop.f32.mrb[16].mxu0 }
 0x15f   :  { %v1384_v6 = vpop.f32.mrb[17].mxu0 }
 0x160   :  { %v1385_v7 = vadd.f32 %v1384_v6, %v1383_v5  ;;  %v1386_v8 = vpop.f32.mrb[18].mxu0  ;;  %v609_v9 = vpack.c.bf16 %v581_v4, %v580_v3 }
 0x161   :  { %v1387_v10 = vpop.f32.mrb[19].mxu0 }
 0x162   :  { %v480_v12 = vadd.f32 %v1385_v7, %v2120_v58  ;;  %v1388_v13 = vadd.f32 %v1387_v10, %v1386_v8  ;;  %1643 = vmatmul.mubr.bf16.gmra.mrb[4].mxu1 %v609_v9 }
 0x164   :  { %v483_v14 = vadd.f32 %v1388_v13, %v2120_v58  ;;  %v582_v15 = vmax.f32 %v480_v12, 0.0 }
 0x166   :  { %v583_v16 = vmax.f32 %v483_v14, 0.0  ;;  %v1389_v21 = vpop.f32.mrb[20].mxu0 }
 0x167   :  { %v1390_v22 = vpop.f32.mrb[21].mxu0 }
 0x168   :  { %v1391_v23 = vadd.f32 %v1390_v22, %v1389_v21  ;;  %v1392_v42 = vpop.f32.mrb[22].mxu0  ;;  %v610_v45 = vpack.c.bf16 %v583_v16, %v582_v15 }
 0x169   :  { %v1393_v46 = vpop.f32.mrb[23].mxu0 }
 0x16a   :  { %v488_v49 = vadd.f32 %v1391_v23, %v2120_v58  ;;  %v1394_v50 = vadd.f32 %v1393_v46, %v1392_v42  ;;  %1646 = vmatprep.mubr.bf16.mxu1 %v610_v45 }
 0x16c   :  { %v491_v56 = vadd.f32 %v1394_v50, %v2120_v58  ;;  %v584_v57 = vmax.f32 %v488_v49, 0.0 }
 0x16e   :  { %v585_v59 = vmax.f32 %v491_v56, 0.0  ;;  %v1395_v60 = vpop.f32.mrb[24].mxu0 }
 0x16f   :  { %v1396_v61 = vpop.f32.mrb[25].mxu0 }
 0x170   :  { %v1397_v62 = vadd.f32 %v1396_v61, %v1395_v60  ;;  %v1398_v63 = vpop.f32.mrb[26].mxu0  ;;  %v611_v0 = vpack.c.bf16 %v585_v59, %v584_v57 }
 0x171   :  { %v1399_v1 = vpop.f32.mrb[27].mxu0 }
 0x172   :  { %v496_v2 = vadd.f32 %v1397_v62, %v2120_v58  ;;  %v1400_v3 = vadd.f32 %v1399_v1, %v1398_v63  ;;  %1647 = vmatmul.mubr.bf16.gmra.mrb[8].mxu1 %v611_v0 }
 0x174   :  { %v499_v4 = vadd.f32 %v1400_v3, %v2120_v58  ;;  %v586_v5 = vmax.f32 %v496_v2, 0.0 }
 0x176   :  { %v587_v6 = vmax.f32 %v499_v4, 0.0  ;;  %v1401_v7 = vpop.f32.mrb[28].mxu0 }
 0x177   :  { %v1402_v8 = vpop.f32.mrb[29].mxu0 }
 0x178   :  { %v1403_v9 = vadd.f32 %v1402_v8, %v1401_v7  ;;  %v1404_v10 = vpop.f32.mrb[30].mxu0  ;;  %v612_v12 = vpack.c.bf16 %v587_v6, %v586_v5 }
 0x179   :  { %v1405_v13 = vpop.f32.mrb[31].mxu0 }
 0x17a   :  { %v504_v14 = vadd.f32 %v1403_v9, %v2120_v58  ;;  %v1406_v15 = vadd.f32 %v1405_v13, %v1404_v10  ;;  %1650 = vmatprep.mubr.bf16.mxu1 %v612_v12 }
 0x17c   :  { %v507_v16 = vadd.f32 %v1406_v15, %v2120_v58  ;;  %v588_v21 = vmax.f32 %v504_v14, 0.0 }
 0x17e   :  { %v589_v22 = vmax.f32 %v507_v16, 0.0  ;;  %v1407_v23 = vpop.f32.mrb[32].mxu0 }
 0x17f   :  { %v1408_v42 = vpop.f32.mrb[33].mxu0 }
 0x180   :  { %v1409_v45 = vadd.f32 %v1408_v42, %v1407_v23  ;;  %v1410_v46 = vpop.f32.mrb[34].mxu0  ;;  %v613_v49 = vpack.c.bf16 %v589_v22, %v588_v21 }
 0x181   :  { %v1411_v50 = vpop.f32.mrb[35].mxu0 }
 0x182   :  { %v512_v56 = vadd.f32 %v1409_v45, %v2120_v58  ;;  %v1412_v57 = vadd.f32 %v1411_v50, %v1410_v46  ;;  %1651 = vmatmul.mubr.bf16.gmra.mrb[12].mxu1 %v613_v49 }
 0x184   :  { %v515_v59 = vadd.f32 %v1412_v57, %v2120_v58  ;;  %v590_v60 = vmax.f32 %v512_v56, 0.0 }
 0x186   :  { %v591_v61 = vmax.f32 %v515_v59, 0.0  ;;  %v1413_v62 = vpop.f32.mrb[36].mxu0 }
 0x187   :  { %v1414_v63 = vpop.f32.mrb[37].mxu0 }
 0x188   :  { %v1415_v0 = vadd.f32 %v1414_v63, %v1413_v62  ;;  %v1416_v1 = vpop.f32.mrb[38].mxu0  ;;  %v614_v2 = vpack.c.bf16 %v591_v61, %v590_v60 }
 0x189   :  { %v1417_v3 = vpop.f32.mrb[39].mxu0 }
 0x18a   :  { %v520_v4 = vadd.f32 %v1415_v0, %v2120_v58  ;;  %v1418_v5 = vadd.f32 %v1417_v3, %v1416_v1  ;;  %1654 = vmatprep.mubr.bf16.mxu1 %v614_v2 }
 0x18c   :  { %v523_v6 = vadd.f32 %v1418_v5, %v2120_v58  ;;  %v592_v7 = vmax.f32 %v520_v4, 0.0 }
 0x18e   :  { %v593_v8 = vmax.f32 %v523_v6, 0.0  ;;  %v1419_v9 = vpop.f32.mrb[40].mxu0 }
 0x18f   :  { %v1420_v10 = vpop.f32.mrb[41].mxu0 }
 0x190   :  { %v1421_v12 = vadd.f32 %v1420_v10, %v1419_v9  ;;  %v1422_v13 = vpop.f32.mrb[42].mxu0  ;;  %v615_v14 = vpack.c.bf16 %v593_v8, %v592_v7 }
 0x191   :  { %v1423_v15 = vpop.f32.mrb[43].mxu0 }
 0x192   :  { %v528_v16 = vadd.f32 %v1421_v12, %v2120_v58  ;;  %v1424_v21 = vadd.f32 %v1423_v15, %v1422_v13  ;;  %1655 = vmatmul.mubr.bf16.gmra.mrb[16].mxu1 %v615_v14 }
 0x194   :  { %v531_v22 = vadd.f32 %v1424_v21, %v2120_v58  ;;  %v594_v23 = vmax.f32 %v528_v16, 0.0 }
 0x196   :  { %v595_v42 = vmax.f32 %v531_v22, 0.0  ;;  %v1425_v45 = vpop.f32.mrb[44].mxu0 }
 0x197   :  { %v1426_v46 = vpop.f32.mrb[45].mxu0 }
 0x198   :  { %v1427_v49 = vadd.f32 %v1426_v46, %v1425_v45  ;;  %v1428_v50 = vpop.f32.mrb[46].mxu0  ;;  %v616_v56 = vpack.c.bf16 %v595_v42, %v594_v23 }
 0x199   :  { %v1429_v57 = vpop.f32.mrb[47].mxu0 }
 0x19a   :  { %v536_v59 = vadd.f32 %v1427_v49, %v2120_v58  ;;  %v1430_v60 = vadd.f32 %v1429_v57, %v1428_v50  ;;  %1658 = vmatprep.mubr.bf16.mxu1 %v616_v56 }
 0x19c   :  { %v539_v61 = vadd.f32 %v1430_v60, %v2120_v58  ;;  %v596_v62 = vmax.f32 %v536_v59, 0.0 }
 0x19e   :  { %v597_v63 = vmax.f32 %v539_v61, 0.0  ;;  %v1431_v0 = vpop.f32.mrb[48].mxu0 }
 0x19f   :  { %v1432_v1 = vpop.f32.mrb[49].mxu0 }
 0x1a0   :  { %v1433_v2 = vadd.f32 %v1432_v1, %v1431_v0  ;;  %v1434_v3 = vpop.f32.mrb[50].mxu0  ;;  %v617_v4 = vpack.c.bf16 %v597_v63, %v596_v62 }
 0x1a1   :  { %v1435_v5 = vpop.f32.mrb[51].mxu0 }
 0x1a2   :  { %v544_v6 = vadd.f32 %v1433_v2, %v2120_v58  ;;  %v1436_v7 = vadd.f32 %v1435_v5, %v1434_v3  ;;  %1659 = vmatmul.mubr.bf16.gmra.mrb[20].mxu1 %v617_v4 }
 0x1a4   :  { %v547_v8 = vadd.f32 %v1436_v7, %v2120_v58  ;;  %v598_v9 = vmax.f32 %v544_v6, 0.0 }
 0x1a6   :  { %v599_v10 = vmax.f32 %v547_v8, 0.0  ;;  %v1437_v12 = vpop.f32.mrb[52].mxu0 }
 0x1a7   :  { %v1438_v13 = vpop.f32.mrb[53].mxu0 }
 0x1a8   :  { %v1439_v14 = vadd.f32 %v1438_v13, %v1437_v12  ;;  %v1440_v15 = vpop.f32.mrb[54].mxu0  ;;  %v618_v16 = vpack.c.bf16 %v599_v10, %v598_v9 }
 0x1a9   :  { %v1441_v21 = vpop.f32.mrb[55].mxu0 }
 0x1aa   :  { %v552_v22 = vadd.f32 %v1439_v14, %v2120_v58  ;;  %v1442_v23 = vadd.f32 %v1441_v21, %v1440_v15  ;;  %1662 = vmatprep.mubr.bf16.mxu1 %v618_v16 }
 0x1ac   :  { %v555_v42 = vadd.f32 %v1442_v23, %v2120_v58  ;;  %v600_v45 = vmax.f32 %v552_v22, 0.0 }
 0x1ae   :  { %v601_v46 = vmax.f32 %v555_v42, 0.0  ;;  %v1443_v49 = vpop.f32.mrb[56].mxu0 }
 0x1af   :  { %v1444_v50 = vpop.f32.mrb[57].mxu0 }
 0x1b0   :  { %v1445_v56 = vadd.f32 %v1444_v50, %v1443_v49  ;;  %v1446_v57 = vpop.f32.mrb[58].mxu0  ;;  %v619_v59 = vpack.c.bf16 %v601_v46, %v600_v45 }
 0x1b1   :  { %v1447_v60 = vpop.f32.mrb[59].mxu0 }
 0x1b2   :  { %v560_v61 = vadd.f32 %v1445_v56, %v2120_v58  ;;  %v1448_v62 = vadd.f32 %v1447_v60, %v1446_v57  ;;  %1663 = vmatmul.mubr.bf16.gmra.mrb[24].mxu1 %v619_v59 }
 0x1b4   :  { %v563_v63 = vadd.f32 %v1448_v62, %v2120_v58  ;;  %v602_v0 = vmax.f32 %v560_v61, 0.0 }
 0x1b6   :  { %v603_v1 = vmax.f32 %v563_v63, 0.0  ;;  %v1449_v2 = vpop.f32.mrb[60].mxu0 }
 0x1b7   :  { %v1450_v3 = vpop.f32.mrb[61].mxu0 }
 0x1b8   :  { %v1451_v4 = vadd.f32 %v1450_v3, %v1449_v2  ;;  %v1452_v5 = vpop.f32.mrb[62].mxu0  ;;  %v620_v6 = vpack.c.bf16 %v603_v1, %v602_v0 }
 0x1b9   :  { %v1453_v7 = vpop.f32.mrb[63].mxu0 }
 0x1ba   :  { %v568_v8 = vadd.f32 %v1451_v4, %v2120_v58  ;;  %v1454_v9 = vadd.f32 %v1453_v7, %v1452_v5  ;;  %1666 = vmatprep.mubr.bf16.mxu1 %v620_v6 }
 0x1bc   :  { %v571_v10 = vadd.f32 %v1454_v9, %v2120_v58  ;;  %v604_v12 = vmax.f32 %v568_v8, 0.0 }
 0x1be   :  { %v605_v13 = vmax.f32 %v571_v10, 0.0 }
 0x1c0   :  { %v621_v14 = vpack.c.bf16 %v605_v13, %v604_v12 }
 0x1c2   :  { %1667 = vmatmul.mubr.bf16.gmra.mrb[28].mxu1 %v621_v14 }
 0x1c3   :  { %902 = vmatprep.mubr.bf16.mxu1 %v2021_v11 }
 0x225   :  { %v1640_v15 = vpop.f32.mrb[0].mxu1 }
 0x226   :  { %v720_v16 = vpop.f32.mrb[1].mxu1 }
 0x227   :  { %v1641_v21 = vpop.f32.mrb[2].mxu1 }
 0x228   :  { %v848_v22 = vpack.c.bf16 %v1641_v21, %v1640_v15  ;;  %v723_v23 = vpop.f32.mrb[3].mxu1 }
 0x229   :  { %v847_v42 = vpack.c.bf16 %v723_v23, %v720_v16 }
 0x235   :  { %v1644_v45 = vpop.f32.mrb[4].mxu1 }
 0x236   :  { %v736_v46 = vpop.f32.mrb[5].mxu1 }
 0x237   :  { %v1645_v49 = vpop.f32.mrb[6].mxu1 }
 0x238   :  { %v850_v50 = vpack.c.bf16 %v1645_v49, %v1644_v45  ;;  %v739_v56 = vpop.f32.mrb[7].mxu1 }
 0x239   :  { %v849_v57 = vpack.c.bf16 %v739_v56, %v736_v46 }
 0x245   :  { %v1648_v59 = vpop.f32.mrb[8].mxu1 }
 0x246   :  { %v752_v58 = vpop.f32.mrb[9].mxu1 }
 0x247   :  { %v1649_v60 = vpop.f32.mrb[10].mxu1 }
 0x248   :  { %v852_v61 = vpack.c.bf16 %v1649_v60, %v1648_v59  ;;  %v755_v62 = vpop.f32.mrb[11].mxu1 }
 0x249   :  { %v851_v63 = vpack.c.bf16 %v755_v62, %v752_v58 }
 0x255   :  { %v1652_v0 = vpop.f32.mrb[12].mxu1 }
 0x256   :  { %v768_v11 = vpop.f32.mrb[13].mxu1 }
 0x257   :  { %v1653_v1 = vpop.f32.mrb[14].mxu1 }
 0x258   :  { %v854_v2 = vpack.c.bf16 %v1653_v1, %v1652_v0  ;;  %v771_v3 = vpop.f32.mrb[15].mxu1 }
 0x259   :  { %v853_v4 = vpack.c.bf16 %v771_v3, %v768_v11 }
 0x265   :  { %v1656_v5 = vpop.f32.mrb[16].mxu1 }
 0x266   :  { %v784_v6 = vpop.f32.mrb[17].mxu1 }
 0x267   :  { %v1657_v7 = vpop.f32.mrb[18].mxu1 }
 0x268   :  { %v856_v8 = vpack.c.bf16 %v1657_v7, %v1656_v5  ;;  %v787_v9 = vpop.f32.mrb[19].mxu1 }
 0x269   :  { %v855_v10 = vpack.c.bf16 %v787_v9, %v784_v6 }
 0x26b   :  { %1479 = vmatprep.subr.bf16.mxu1 %v855_v10 }
 0x26c   :  { %1480 = vmatpush3.bf16.msra.mxu1 %v847_v42 }
 0x26d   :  { %1481 = vmatprep.subr.bf16.mxu1 %v856_v8 }
 0x270   :  { %1482 = vmatpush3.bf16.msra.mxu1 %v848_v22 }
 0x275   :  { %v1660_v12 = vpop.f32.mrb[20].mxu1 }
 0x276   :  { %v800_v13 = vpop.f32.mrb[21].mxu1 }
 0x277   :  { %v1661_v14 = vpop.f32.mrb[22].mxu1 }
 0x278   :  { %v858_v15 = vpack.c.bf16 %v1661_v14, %v1660_v12  ;;  %v803_v16 = vpop.f32.mrb[23].mxu1 }
 0x279   :  { %v857_v21 = vpack.c.bf16 %v803_v16, %v800_v13 }
 0x27b   :  { %1483 = vmatprep.subr.bf16.mxu1 %v857_v21 }
 0x27c   :  { %1484 = vmatpush3.bf16.msra.mxu1 %v849_v57 }
 0x27d   :  { %1485 = vmatprep.subr.bf16.mxu1 %v858_v15 }
 0x280   :  { %1486 = vmatpush3.bf16.msra.mxu1 %v850_v50 }
 0x285   :  { %v1664_v23 = vpop.f32.mrb[24].mxu1 }
 0x286   :  { %v816_v45 = vpop.f32.mrb[25].mxu1 }
 0x287   :  { %v1665_v46 = vpop.f32.mrb[26].mxu1 }
 0x288   :  { %v860_v49 = vpack.c.bf16 %v1665_v46, %v1664_v23  ;;  %v819_v56 = vpop.f32.mrb[27].mxu1 }
 0x289   :  { %v859_v59 = vpack.c.bf16 %v819_v56, %v816_v45 }
 0x28b   :  { %1487 = vmatprep.subr.bf16.mxu1 %v859_v59 }
 0x28c   :  { %1488 = vmatpush3.bf16.msra.mxu1 %v851_v63 }
 0x28d   :  { %1489 = vmatprep.subr.bf16.mxu1 %v860_v49 }
 0x290   :  { %1490 = vmatpush3.bf16.msra.mxu1 %v852_v61 }
 0x295   :  { %v1668_v22 = vpop.f32.mrb[28].mxu1 }
 0x296   :  { %v832_v42 = vpop.f32.mrb[29].mxu1 }
 0x297   :  { %v1669_v58 = vpop.f32.mrb[30].mxu1 }
 0x298   :  { %v862_v60 = vpack.c.bf16 %v1669_v58, %v1668_v22  ;;  %v835_v62 = vpop.f32.mrb[31].mxu1 }
 0x299   :  { %v861_v0 = vpack.c.bf16 %v835_v62, %v832_v42 }
 0x29b   :  { %1491 = vmatprep.subr.bf16.mxu1 %v861_v0 }
 0x29c   :  { %1492 = vmatpush3.bf16.msra.mxu1 %v853_v4 }
 0x29d   :  { %1493 = vmatprep.subr.bf16.mxu1 %v862_v60 }
 0x2a0   :  { %1494 = vmatpush3.bf16.msra.mxu1 %v854_v2 }
 0x2a3   :  { %903 = vmatmul.mubr.bf16.vlgmr.msra.gmra.mrb[32].mxu1 %v2024_v17  ;;  %v1908_v17 = vmov 1966171168  }
 0x2a4   :  { %910 = vmatprep.mubr.bf16.mxu1 %v2026_v18  ;;  %v1090_v18 = vunpack.c.l.s4 %v1908_v17 }
 0x2ab   :  { %911 = vmatmul.mubr.bf16.gmra.mrb[36].mxu1 %v2030_v19  ;;  %v1092_v19 = vlaneseq }
 0x2ac   :  { %918 = vmatprep.mubr.bf16.mxu1 %v2032_v20 }
 0x2b3   :  { %919 = vmatmul.mubr.bf16.gmra.mrb[40].mxu1 %v2036_v24  ;;  %v2189_v24 = vld [vmem:[%s2281_s4] ss:$0 sm:$0xff] }
 0x2b4   :  { %926 = vmatprep.mubr.bf16.mxu1 %v2038_v25 }
 0x2bb   :  { %927 = vmatmul.mubr.bf16.gmra.mrb[44].mxu1 %v2042_v26  ;;  %v1091_v26 = vunpack.c.0.s8 %v1090_v18 }
 0x2bc   :  { %934 = vmatprep.mubr.bf16.mxu1 %v2044_v27  ;;  %v1093_v27 = vshrl.u32 %v1092_v19, 7 }
 0x2c3   :  { %935 = vmatmul.mubr.bf16.gmra.mrb[48].mxu1 %v2048_v28 }
 0x2c4   :  { %942 = vmatprep.mubr.bf16.mxu1 %v2050_v29 }
 0x2cb   :  { %943 = vmatmul.mubr.bf16.gmra.mrb[52].mxu1 %v2054_v30  ;;  %v2194_v30 = vld.sshfl [vmem:[%s2282_s5] sm:$0x11 pattern:$0x75316420] }
 0x2cc   :  { %950 = vmatprep.mubr.bf16.mxu1 %v2056_v31 }
 0x2d3   :  { %951 = vmatmul.mubr.bf16.gmra.mrb[56].mxu1 %v2060_v32  ;;  %v1088_v32 = vcombine.high %v2194_v30, %v2194_v30 }
 0x2d4   :  { %958 = vmatprep.mubr.bf16.mxu1 %v2062_v33  ;;  %v2198_v33 = vsub.s32 %v1091_v26, %v1093_v27 }
 0x2db   :  { %959 = vmatmul.mubr.bf16.gmra.mrb[60].mxu1 %v2066_v34 }
 0x2dc   :  { %966 = vmatprep.mubr.bf16.mxu1 %v2068_v35 }
 0x2e3   :  { %967 = vmatmul.mubr.bf16.gmra.mrb[64].mxu1 %v2072_v36  ;;  %v1095_v36 = vrot.slane %v2194_v30, %v2198_v33  ;;  %v1781_v30 = vld [vmem:[#allocation8 + $0x38] sm:$0xff]  }
 0x2e4   :  { %974 = vmatprep.mubr.bf16.mxu1 %v2074_v37  ;;  %v1102_v37 = vrot.slane %v1088_v32, %v2198_v33 }
 0x2e6   :  { %1137 = vmatprep.mubr.bf16.mxu0 %v1102_v37 }
 0x2eb   :  { %975 = vmatmul.mubr.bf16.gmra.mrb[68].mxu1 %v2078_v38 }
 0x2ec   :  { %982 = vmatprep.mubr.bf16.mxu1 %v2080_v39 }
 0x2f3   :  { %983 = vmatmul.mubr.bf16.gmra.mrb[72].mxu1 %v2084_v40 }
 0x2f4   :  { %990 = vmatprep.mubr.bf16.mxu1 %v2086_v41 }
 0x2fb   :  { %991 = vmatmul.mubr.bf16.gmra.mrb[76].mxu1 %v2090_v43 }
 0x2fc   :  { %998 = vmatprep.mubr.bf16.mxu1 %v2092_v44 }
 0x303   :  { %999 = vmatmul.mubr.bf16.gmra.mrb[80].mxu1 %v2096_v47 }
 0x304   :  { %1006 = vmatprep.mubr.bf16.mxu1 %v2098_v48 }
 0x30b   :  { %1007 = vmatmul.mubr.bf16.gmra.mrb[84].mxu1 %v2102_v51 }
 0x30c   :  { %1014 = vmatprep.mubr.bf16.mxu1 %v2104_v52 }
 0x313   :  { %1015 = vmatmul.mubr.bf16.gmra.mrb[88].mxu1 %v2108_v53 }
 0x314   :  { %1022 = vmatprep.mubr.bf16.mxu1 %v2110_v54 }
 0x31b   :  { %1023 = vmatmul.mubr.bf16.gmra.mrb[92].mxu1 %v2114_v55 }
 0x376   :  { %v1495_v20 = vpop.f32.mrb[32].mxu1 }
 0x377   :  { %v1496_v25 = vpop.f32.mrb[33].mxu1 }
 0x378   :  { %v1497_v28 = vadd.f32 %v1496_v25, %v1495_v20  ;;  %v1498_v29 = vpop.f32.mrb[34].mxu1 }
 0x379   :  { %v1499_v31 = vpop.f32.mrb[35].mxu1 }
 0x37a   :  { %v905_v34 = vadd.f32 %v1497_v28, %v2189_v24  ;;  %v1500_v35 = vadd.f32 %v1499_v31, %v1498_v29 }
 0x37c   :  { %v908_v38 = vadd.f32 %v1500_v35, %v2189_v24  ;;  %v1031_v39 = vmax.f32 %v905_v34, 0.0 }
 0x37e   :  { %v1032_v40 = vmax.f32 %v908_v38, 0.0  ;;  %v1501_v41 = vpop.f32.mrb[36].mxu1 }
 0x37f   :  { %v1502_v43 = vpop.f32.mrb[37].mxu1 }
 0x380   :  { %v2205_v44 = vpack.c.bf16 %v1032_v40, %v1031_v39  ;;  %v1503_v47 = vadd.f32 %v1502_v43, %v1501_v41  ;;  %v1504_v48 = vpop.f32.mrb[38].mxu1 }
 0x381   :  { %v1505_v51 = vpop.f32.mrb[39].mxu1 }
 0x382   :  { %v913_v52 = vadd.f32 %v1503_v47, %v2189_v24  ;;  %v1506_v53 = vadd.f32 %v1505_v51, %v1504_v48 }
 0x384   :  { %v916_v54 = vadd.f32 %v1506_v53, %v2189_v24  ;;  %v1033_v55 = vmax.f32 %v913_v52, 0.0 }
 0x386   :  { %v1034_v50 = vmax.f32 %v916_v54, 0.0  ;;  %v1507_v57 = vpop.f32.mrb[40].mxu1 }
 0x387   :  { %v1508_v61 = vpop.f32.mrb[41].mxu1 }
 0x388   :  { %v2209_v63 = vpack.c.bf16 %v1034_v50, %v1033_v55  ;;  %v1509_v11 = vadd.f32 %v1508_v61, %v1507_v57  ;;  %v1510_v1 = vpop.f32.mrb[42].mxu1 }
 0x389   :  { %v1511_v2 = vpop.f32.mrb[43].mxu1 }
 0x38a   :  { %v921_v3 = vadd.f32 %v1509_v11, %v2189_v24  ;;  %v1512_v4 = vadd.f32 %v1511_v2, %v1510_v1 }
 0x38c   :  { %v924_v5 = vadd.f32 %v1512_v4, %v2189_v24  ;;  %v1035_v6 = vmax.f32 %v921_v3, 0.0 }
 0x38e   :  { %v1036_v7 = vmax.f32 %v924_v5, 0.0  ;;  %v1513_v8 = vpop.f32.mrb[44].mxu1 }
 0x38f   :  { %v1514_v9 = vpop.f32.mrb[45].mxu1 }
 0x390   :  { %v2213_v10 = vpack.c.bf16 %v1036_v7, %v1035_v6  ;;  %v1515_v12 = vadd.f32 %v1514_v9, %v1513_v8  ;;  %v1516_v13 = vpop.f32.mrb[46].mxu1 }
 0x391   :  { %v1517_v14 = vpop.f32.mrb[47].mxu1 }
 0x392   :  { %v929_v15 = vadd.f32 %v1515_v12, %v2189_v24  ;;  %v1518_v16 = vadd.f32 %v1517_v14, %v1516_v13 }
 0x394   :  { %v932_v21 = vadd.f32 %v1518_v16, %v2189_v24  ;;  %v1037_v23 = vmax.f32 %v929_v15, 0.0 }
 0x396   :  { %v1038_v45 = vmax.f32 %v932_v21, 0.0  ;;  %v1519_v46 = vpop.f32.mrb[48].mxu1 }
 0x397   :  { %v1520_v49 = vpop.f32.mrb[49].mxu1 }
 0x398   :  { %v2217_v56 = vpack.c.bf16 %v1038_v45, %v1037_v23  ;;  %v1521_v59 = vadd.f32 %v1520_v49, %v1519_v46  ;;  %v1522_v22 = vpop.f32.mrb[50].mxu1 }
 0x399   :  { %v1523_v42 = vpop.f32.mrb[51].mxu1 }
 0x39a   :  { %v937_v58 = vadd.f32 %v1521_v59, %v2189_v24  ;;  %v1524_v60 = vadd.f32 %v1523_v42, %v1522_v22 }
 0x39c   :  { %v940_v62 = vadd.f32 %v1524_v60, %v2189_v24  ;;  %v1039_v0 = vmax.f32 %v937_v58, 0.0 }
 0x39e   :  { %v1040_v17 = vmax.f32 %v940_v62, 0.0  ;;  %v1525_v18 = vpop.f32.mrb[52].mxu1 }
 0x39f   :  { %v1526_v19 = vpop.f32.mrb[53].mxu1 }
 0x3a0   :  { %v2221_v20 = vpack.c.bf16 %v1040_v17, %v1039_v0  ;;  %v1527_v25 = vadd.f32 %v1526_v19, %v1525_v18  ;;  %v1528_v26 = vpop.f32.mrb[54].mxu1 }
 0x3a1   :  { %v1529_v27 = vpop.f32.mrb[55].mxu1 }
 0x3a2   :  { %v945_v28 = vadd.f32 %v1527_v25, %v2189_v24  ;;  %v1530_v29 = vadd.f32 %v1529_v27, %v1528_v26 }
 0x3a4   :  { %v948_v31 = vadd.f32 %v1530_v29, %v2189_v24  ;;  %v1041_v32 = vmax.f32 %v945_v28, 0.0 }
 0x3a6   :  { %v1042_v34 = vmax.f32 %v948_v31, 0.0  ;;  %v1531_v35 = vpop.f32.mrb[56].mxu1 }
 0x3a7   :  { %v1532_v37 = vpop.f32.mrb[57].mxu1 }
 0x3a8   :  { %v2225_v38 = vpack.c.bf16 %v1042_v34, %v1041_v32  ;;  %v1533_v39 = vadd.f32 %v1532_v37, %v1531_v35  ;;  %v1534_v40 = vpop.f32.mrb[58].mxu1 }
 0x3a9   :  { %v1535_v41 = vpop.f32.mrb[59].mxu1 }
 0x3aa   :  { %v953_v43 = vadd.f32 %v1533_v39, %v2189_v24  ;;  %v1536_v47 = vadd.f32 %v1535_v41, %v1534_v40 }
 0x3ac   :  { %v956_v48 = vadd.f32 %v1536_v47, %v2189_v24  ;;  %v1043_v51 = vmax.f32 %v953_v43, 0.0 }
 0x3ae   :  { %v1044_v52 = vmax.f32 %v956_v48, 0.0  ;;  %v1537_v53 = vpop.f32.mrb[60].mxu1 }
 0x3af   :  { %v1538_v54 = vpop.f32.mrb[61].mxu1 }
 0x3b0   :  { %v2229_v55 = vpack.c.bf16 %v1044_v52, %v1043_v51  ;;  %v1539_v50 = vadd.f32 %v1538_v54, %v1537_v53  ;;  %v1540_v57 = vpop.f32.mrb[62].mxu1 }
 0x3b1   :  { %v1541_v61 = vpop.f32.mrb[63].mxu1 }
 0x3b2   :  { %v961_v11 = vadd.f32 %v1539_v50, %v2189_v24  ;;  %v1542_v1 = vadd.f32 %v1541_v61, %v1540_v57 }
 0x3b4   :  { %v964_v2 = vadd.f32 %v1542_v1, %v2189_v24  ;;  %v1045_v3 = vmax.f32 %v961_v11, 0.0 }
 0x3b6   :  { %v1046_v4 = vmax.f32 %v964_v2, 0.0  ;;  %v1543_v5 = vpop.f32.mrb[64].mxu1 }
 0x3b7   :  { %v1544_v6 = vpop.f32.mrb[65].mxu1 }
 0x3b8   :  { %v2233_v7 = vpack.c.bf16 %v1046_v4, %v1045_v3  ;;  %v1545_v8 = vadd.f32 %v1544_v6, %v1543_v5  ;;  %v1546_v9 = vpop.f32.mrb[66].mxu1 }
 0x3b9   :  { %v1547_v12 = vpop.f32.mrb[67].mxu1 }
 0x3ba   :  { %v969_v13 = vadd.f32 %v1545_v8, %v2189_v24  ;;  %v1548_v14 = vadd.f32 %v1547_v12, %v1546_v9 }
 0x3bc   :  { %v972_v15 = vadd.f32 %v1548_v14, %v2189_v24  ;;  %v1047_v16 = vmax.f32 %v969_v13, 0.0 }
 0x3be   :  { %v1048_v21 = vmax.f32 %v972_v15, 0.0  ;;  %v1549_v23 = vpop.f32.mrb[68].mxu1 }
 0x3bf   :  { %v1550_v45 = vpop.f32.mrb[69].mxu1 }
 0x3c0   :  { %v1551_v46 = vadd.f32 %v1550_v45, %v1549_v23  ;;  %v1552_v49 = vpop.f32.mrb[70].mxu1  ;;  %v1071_v59 = vpack.c.bf16 %v1048_v21, %v1047_v16 }
 0x3c1   :  { %v1553_v22 = vpop.f32.mrb[71].mxu1 }
 0x3c2   :  { %v977_v42 = vadd.f32 %v1551_v46, %v2189_v24  ;;  %v1554_v58 = vadd.f32 %v1553_v22, %v1552_v49  ;;  %1591 = vmatprep.subr.bf16.mxu0 %v1071_v59 }
 0x3c3   :  { %1592 = vmatpush3.bf16.msra.mxu0 %v2205_v44 }
 0x3c4   :  { %v980_v60 = vadd.f32 %v1554_v58, %v2189_v24  ;;  %v1049_v62 = vmax.f32 %v977_v42, 0.0 }
 0x3c6   :  { %v1050_v0 = vmax.f32 %v980_v60, 0.0  ;;  %v1555_v17 = vpop.f32.mrb[72].mxu1 }
 0x3c7   :  { %v1556_v18 = vpop.f32.mrb[73].mxu1 }
 0x3c8   :  { %v1557_v19 = vadd.f32 %v1556_v18, %v1555_v17  ;;  %v1558_v25 = vpop.f32.mrb[74].mxu1  ;;  %v1072_v26 = vpack.c.bf16 %v1050_v0, %v1049_v62 }
 0x3c9   :  { %v1559_v27 = vpop.f32.mrb[75].mxu1 }
 0x3ca   :  { %v985_v28 = vadd.f32 %v1557_v19, %v2189_v24  ;;  %v1560_v29 = vadd.f32 %v1559_v27, %v1558_v25  ;;  %1593 = vmatprep.subr.bf16.mxu0 %v1072_v26 }
 0x3cb   :  { %1594 = vmatpush3.bf16.msra.mxu0 %v2209_v63 }
 0x3cc   :  { %v988_v31 = vadd.f32 %v1560_v29, %v2189_v24  ;;  %v1051_v32 = vmax.f32 %v985_v28, 0.0 }
 0x3ce   :  { %v1052_v44 = vmax.f32 %v988_v31, 0.0  ;;  %v1561_v34 = vpop.f32.mrb[76].mxu1 }
 0x3cf   :  { %v1562_v35 = vpop.f32.mrb[77].mxu1 }
 0x3d0   :  { %v1563_v37 = vadd.f32 %v1562_v35, %v1561_v34  ;;  %v1564_v39 = vpop.f32.mrb[78].mxu1  ;;  %v1073_v40 = vpack.c.bf16 %v1052_v44, %v1051_v32  ;;  %v1774_v32 = vld [vmem:[#allocation8] sm:$0xff]   ;;  %v1909_v44 = vmov 0.0   ;;  %v1775_v34 = vld [vmem:[#allocation8 + $0x8] sm:$0xff]  }
 0x3d1   :  { %v1565_v41 = vpop.f32.mrb[79].mxu1  ;;  %v1778_v35 = vld [vmem:[#allocation8 + $0x20] sm:$0xff]  }
 0x3d2   :  { %v993_v43 = vadd.f32 %v1563_v37, %v2189_v24  ;;  %v1566_v47 = vadd.f32 %v1565_v41, %v1564_v39  ;;  %1595 = vmatprep.subr.bf16.mxu0 %v1073_v40  ;;  %v1780_v37 = vld [vmem:[#allocation8 + $0x30] sm:$0xff]  }
 0x3d3   :  { %1596 = vmatpush3.bf16.msra.mxu0 %v2213_v10 }
 0x3d4   :  { %v996_v48 = vadd.f32 %v1566_v47, %v2189_v24  ;;  %v1053_v51 = vmax.f32 %v993_v43, 0.0  ;;  %v1334_v47 = vld [vmem:[%s2284_s7] ss:$0 sm:$0xff] }
 0x3d6   :  { %v1054_v63 = vmax.f32 %v996_v48, 0.0  ;;  %v1567_v52 = vpop.f32.mrb[80].mxu1 }
 0x3d7   :  { %v1568_v53 = vpop.f32.mrb[81].mxu1 }
 0x3d8   :  { %v1569_v54 = vadd.f32 %v1568_v53, %v1567_v52  ;;  %v1570_v50 = vpop.f32.mrb[82].mxu1  ;;  %v1074_v57 = vpack.c.bf16 %v1054_v63, %v1053_v51 }
 0x3d9   :  { %v1571_v61 = vpop.f32.mrb[83].mxu1 }
 0x3da   :  { %v1001_v11 = vadd.f32 %v1569_v54, %v2189_v24  ;;  %v1572_v1 = vadd.f32 %v1571_v61, %v1570_v50  ;;  %1597 = vmatprep.subr.bf16.mxu0 %v1074_v57 }
 0x3db   :  { %1598 = vmatpush3.bf16.msra.mxu0 %v2217_v56 }
 0x3dc   :  { %v1004_v2 = vadd.f32 %v1572_v1, %v2189_v24  ;;  %v1055_v3 = vmax.f32 %v1001_v11, 0.0 }
 0x3de   :  { %v1056_v10 = vmax.f32 %v1004_v2, 0.0  ;;  %v1573_v4 = vpop.f32.mrb[84].mxu1 }
 0x3df   :  { %v1574_v5 = vpop.f32.mrb[85].mxu1 }
 0x3e0   :  { %v1575_v6 = vadd.f32 %v1574_v5, %v1573_v4  ;;  %v1576_v8 = vpop.f32.mrb[86].mxu1  ;;  %v1075_v9 = vpack.c.bf16 %v1056_v10, %v1055_v3 }
 0x3e1   :  { %v1577_v12 = vpop.f32.mrb[87].mxu1 }
 0x3e2   :  { %v1009_v13 = vadd.f32 %v1575_v6, %v2189_v24  ;;  %v1578_v14 = vadd.f32 %v1577_v12, %v1576_v8  ;;  %1599 = vmatprep.subr.bf16.mxu0 %v1075_v9 }
 0x3e3   :  { %1600 = vmatpush3.bf16.msra.mxu0 %v2221_v20 }
 0x3e4   :  { %v1012_v15 = vadd.f32 %v1578_v14, %v2189_v24  ;;  %v1057_v16 = vmax.f32 %v1009_v13, 0.0 }
 0x3e6   :  { %v1058_v56 = vmax.f32 %v1012_v15, 0.0  ;;  %v1579_v21 = vpop.f32.mrb[88].mxu1 }
 0x3e7   :  { %v1580_v23 = vpop.f32.mrb[89].mxu1 }
 0x3e8   :  { %v1581_v45 = vadd.f32 %v1580_v23, %v1579_v21  ;;  %v1582_v46 = vpop.f32.mrb[90].mxu1  ;;  %v1076_v49 = vpack.c.bf16 %v1058_v56, %v1057_v16 }
 0x3e9   :  { %v1583_v59 = vpop.f32.mrb[91].mxu1 }
 0x3ea   :  { %v1017_v22 = vadd.f32 %v1581_v45, %v2189_v24  ;;  %v1584_v42 = vadd.f32 %v1583_v59, %v1582_v46  ;;  %1601 = vmatprep.subr.bf16.mxu0 %v1076_v49 }
 0x3eb   :  { %1602 = vmatpush3.bf16.msra.mxu0 %v2225_v38 }
 0x3ec   :  { %v1020_v58 = vadd.f32 %v1584_v42, %v2189_v24  ;;  %v1059_v60 = vmax.f32 %v1017_v22, 0.0 }
 0x3ee   :  { %v1060_v20 = vmax.f32 %v1020_v58, 0.0  ;;  %v1585_v62 = vpop.f32.mrb[92].mxu1 }
 0x3ef   :  { %v1586_v0 = vpop.f32.mrb[93].mxu1 }
 0x3f0   :  { %v1587_v17 = vadd.f32 %v1586_v0, %v1585_v62  ;;  %v1588_v18 = vpop.f32.mrb[94].mxu1  ;;  %v1077_v19 = vpack.c.bf16 %v1060_v20, %v1059_v60 }
 0x3f1   :  { %v1589_v25 = vpop.f32.mrb[95].mxu1 }
 0x3f2   :  { %v1025_v26 = vadd.f32 %v1587_v17, %v2189_v24  ;;  %v1590_v27 = vadd.f32 %v1589_v25, %v1588_v18  ;;  %1603 = vmatprep.subr.bf16.mxu0 %v1077_v19 }
 0x3f3   :  { %1604 = vmatpush3.bf16.msra.mxu0 %v2229_v55  ;;  %v1776_v55 = vld [vmem:[#allocation8 + $0x10] sm:$0xff]  }
 0x3f4   :  { %v1028_v28 = vadd.f32 %v1590_v27, %v2189_v24  ;;  %v1061_v29 = vmax.f32 %v1025_v26, 0.0  ;;  %v1777_v24 = vld [vmem:[#allocation8 + $0x18] sm:$0xff]  }
 0x3f6   :  { %v1062_v38 = vmax.f32 %v1028_v28, 0.0 }
 0x3f8   :  { %v1078_v31 = vpack.c.bf16 %v1062_v38, %v1061_v29 }
 0x3fa   :  { %1605 = vmatprep.subr.bf16.mxu0 %v1078_v31 }
 0x3fb   :  { %1606 = vmatpush3.bf16.msra.mxu0 %v2233_v7  ;;  %v1779_v7 = vld [vmem:[#allocation8 + $0x28] sm:$0xff]  }
 0x3fc   :  { %1670 = vmatprep.subr.bf16.mxu0 %v1909_v44 }
 0x3fe   :  { %1138 = vmatmul.mubr.bf16.vlgmr.msra.gmra.mrb[64].mxu0 %v1095_v36 }
 0x3ff   :  { %1671 = vmatpush3.bf16.msra.mxu0 %v1774_v32  ;;  %1686 = vmatprep.mubr.msk.bf16.mxu0 %vm1910_vm0, %v1909_v44 }
 0x400   :  { %1672 = vmatprep.subr.bf16.mxu0 %v1909_v44 }
 0x403   :  { %1673 = vmatpush3.bf16.msra.mxu0 %v1775_v34 }
 0x404   :  { %1674 = vmatprep.subr.bf16.mxu0 %v1909_v44 }
 0x407   :  { %1675 = vmatpush3.bf16.msra.mxu0 %v1776_v55 }
 0x408   :  { %1676 = vmatprep.subr.bf16.mxu0 %v1909_v44 }
 0x40b   :  { %1677 = vmatpush3.bf16.msra.mxu0 %v1777_v24 }
 0x40c   :  { %1678 = vmatprep.subr.bf16.mxu0 %v1909_v44 }
 0x40f   :  { %1679 = vmatpush3.bf16.msra.mxu0 %v1778_v35 }
 0x410   :  { %1680 = vmatprep.subr.bf16.mxu0 %v1909_v44 }
 0x413   :  { %1681 = vmatpush3.bf16.msra.mxu0 %v1779_v7 }
 0x414   :  { %1682 = vmatprep.subr.bf16.mxu0 %v1909_v44 }
 0x417   :  { %1683 = vmatpush3.bf16.msra.mxu0 %v1780_v37 }
 0x418   :  { %1684 = vmatprep.subr.bf16.mxu0 %v1909_v44 }
 0x41b   :  { %1685 = vmatpush3.bf16.msra.mxu0 %v1781_v30 }
 0x4d1   :  { %v1607_v33 = vpop.f32.mrb[64].mxu0 }
 0x4d2   :  { %v1608_v36 = vpop.f32.mrb[65].mxu0 }
 0x4d3   :  { %v1609_v39 = vadd.f32 %v1608_v36, %v1607_v33  ;;  %v1610_v40 = vpop.f32.mrb[66].mxu0 }
 0x4d4   :  { %v1611_v41 = vpop.f32.mrb[67].mxu0 }
 0x4d5   :  { %v1145_v43 = vpack.c.bf16 %v1609_v39, %v1609_v39 }
 0x4d7   :  { %1687 = vmatmul.mubr.bf16.vlgmr.msra.gmra.mrb[68].mxu0 %v1145_v43 }
 0x5aa   :  { %v1251_v48 = vpop.f32.mrb[68].mxu0 }
 0x5ab   :  { %v1252_v51 = vadd.f32 %v1334_v47, %v1251_v48  ;;  %v1688_v63 = vpop.f32.mrb[69].mxu0 }
 0x5ac   :  { %v1254_v52 = vpop.f32.mrb[70].mxu0 }
 0x5ad   :  { %1257 = vst [vmem:[#allocation10] sm:$0x3] %v1252_v51  ;;  %v1689_v53 = vpop.f32.mrb[71].mxu0 }
 0x5ae   :  { %1881 = shalt.err (!%p1878_p8)
}
 0x5af   :  { %s1882_s7 = scalar_lea.hbm %s2285_s8, 32 }
 0x5b0   :  { %p1883_p9 = scmp.ne.s32.totalorder %s2285_s8, %s1882_s7  ;;  %p1886_p10 = scmp.lt.u32.totalorder %s1882_s7, %s2285_s8 }
 0x5b2   :  { %p1888_p11 = pnand %p1886_p10, %p1883_p9 }
 0x5b4   :  { %1891 = shalt.err (!%p1888_p11)
}
 0x5b5   :  { %1267 = dma.vmem_to_hbm [thread:$0]  %s1265_s14, 32, %s2285_s8, [#allocation4]  }
 0x5b6   :  { %1898 = dma.done.wait [#allocation4], 32  }
 0x5b7   :  { %1899 = vsyncadd [#allocation4], 4294967264 }
 0x5b8   :  { %1271 = vsyncpa [#allocation3], 1 }
 0x5b9   :  { %1272 = vsyncpa [#allocation6], 1 }
 0x5ba   :  { %1273 = vsyncpa [#allocation9], 1 }
 0x5bb   :  { %1274 = vsyncpa [#allocation4], 1 }

</bundles_post_ra>
